<compile_context>
chip_gen: v6e
topology: v6e:2x2x1
jax: 0.10.0
libtpu: 0.0.40
codegen_flags: <defaults>
</compile_context>

<pallas_src>
import functools

import jax
import jax.numpy as jnp
from jax import lax
from jax.experimental import pallas as pl
from jax.experimental.pallas import tpu as pltpu


def self_attn_kernel(xq_ref, xkv_ref, mt_ref, u_ref, wv_ref, bv_ref, gamma_ref,
                     out_ref, qhat_s, m_s, l_s, acc_s,
                     *, tk, resident_kv, bf16_exp):
    # xq_ref block: (C, TQ) f32.  xkv_ref block: (C, N) or (C, TK) bf16.
    ki = pl.program_id(2)
    nk = pl.num_programs(2)

    @pl.when(ki == 0)
    def _init():
        # qhat[c, n] = sum_c' Mt[c, c'] * x[c', n] + u[c]  (folded query/key 1x1 convs)
        xq = xq_ref[...]                                               # (C, TQ) f32
        qh = jnp.dot(mt_ref[...], xq, preferred_element_type=jnp.float32)
        qh = qh + u_ref[...]                                           # (C,1) bcast
        # Only the O(N^2) matmul operands need bf16; qhat is one of them.
        qhat_s[...] = qh.astype(jnp.bfloat16)
        m_s[...] = jnp.full_like(m_s, -jnp.inf)
        l_s[...] = jnp.zeros_like(l_s)
        acc_s[...] = jnp.zeros_like(acc_s)

    if resident_kv:
        start = pl.multiple_of(ki * tk, tk)
        xkv = xkv_ref[:, pl.ds(start, tk)]                             # (C, TK) bf16
    else:
        xkv = xkv_ref[...]                                             # (C, TK) bf16

    # energy[m, n] = sum_c x[c, m] * qhat[c, n]  ->  (TK, TQ); softmax over m (axis 0).
    energy = lax.dot_general(
        xkv, qhat_s[...],
        dimension_numbers=(((0,), (0,)), ((), ())),
        preferred_element_type=jnp.float32)                            # (TK, TQ) f32

    m_prev = m_s[...]                                                  # (1, TQ)
    m_new = jnp.maximum(m_prev, jnp.max(energy, axis=0, keepdims=True))
    alpha = jnp.exp(m_prev - m_new)                                    # (1, TQ) f32

    if bf16_exp:
        # v6e/v7x: bf16 EUP roughly doubles exp throughput; p feeds the MXU as
        # bf16 anyway.  Sum accumulation stays f32.
        p = jnp.exp((energy - m_new).astype(jnp.bfloat16))             # (TK, TQ) bf16
        p_sum = jnp.sum(p.astype(jnp.float32), axis=0, keepdims=True)  # (1, TQ) f32
        p_mm = p
    else:
        # v5e (no bf16 VPU/EUP): keep exp in f32.
        p = jnp.exp(energy - m_new)                                    # (TK, TQ) f32
        p_sum = jnp.sum(p, axis=0, keepdims=True)
        p_mm = p.astype(jnp.bfloat16)

    l_s[...] = alpha * l_s[...] + p_sum
    # acc[c, n] += sum_m x[c, m] * p[m, n]  (lane-dense (C, TQ) accumulator)
    acc_s[...] = alpha * acc_s[...] + jnp.dot(
        xkv, p_mm, preferred_element_type=jnp.float32)
    m_s[...] = m_new

    @pl.when(ki == nk - 1)
    def _finalize():
        # l >= 1 always (the running-max element contributes exp(0) = 1), so the
        # approximate reciprocal is well-conditioned; revisit if masking is added.
        inv_l = pl.reciprocal(l_s[...], approx=True)                   # (1, TQ)
        ctx = acc_s[...] * inv_l                                       # (C, TQ)
        # Folded value conv: attention rows sum to 1, so bias folds out of the sum.
        o = jnp.dot(wv_ref[...], ctx, preferred_element_type=jnp.float32) + bv_ref[...]
        gamma = gamma_ref[0]
        out_ref[...] = (gamma * o + xq_ref[...]).astype(out_ref.dtype)


def _tpu_generation():
    try:
        kind = jax.devices()[0].device_kind.lower()
    except Exception:
        return 0
    for g in (7, 6, 5, 4):
        if f"v{g}" in kind:
            return g
    return 0


def _vmem_capacity_bytes(gen):
    try:
        return int(pltpu.get_tpu_info().vmem_capacity_bytes)
    except Exception:
        return (64 << 20) if gen >= 7 else (128 << 20)


def _pick_tile(n, prefs=(512, 256, 128)):
    for p in prefs:
        if n % p == 0:
            return p
    return n  # full-dim fallback: correct, but non-128-aligned N will be slow.


def self_attn_pallas(x_nchw, Wq, bq, Wk, bk, Wv, bv, gamma, *,
                     tq=None, tk=None, resident_kv=None):
    """x_nchw: (B, C, W, H) f32.  1x1 Conv2d weights in torch layout (Cout, Cin)."""
    B, C, W, H = x_nchw.shape
    N = W * H
    x_bcn = x_nchw.reshape(B, C, N)                # free reshape, no HBM transpose
    x_kv_bf16 = x_bcn.astype(jnp.bfloat16)         # kv stream is bf16 end-to-end

    gen = _tpu_generation()
    vmem_cap = _vmem_capacity_bytes(gen)
    bf16_exp = gen >= 6                            # bf16 EUP on v6e/v7x only

    tq = _pick_tile(N) if tq is None else tq
    tk = _pick_tile(N) if tk is None else tk
    # Keep >= 2 units of "parallel" grid work so dual-TC chips (v7x) stay busy.
    while tq > 128 and B * (N // tq) < 2 and N % (tq // 2) == 0:
        tq //= 2
    assert N % tq == 0 and N % tk == 0, "spatial size must be divisible by tiles"

    # Fold query/key convs: softmax-invariant terms cancel, leaving
    #   energy'[m, n] = x[:, m]^T (Wk^T Wq) x[:, n] + (Wk^T bq) . x[:, m]
    Mt = (Wk.T @ Wq).astype(jnp.float32)           # (C, C)
    u = (Wk.T @ bq).reshape(C, 1).astype(jnp.float32)
    wv = Wv.astype(jnp.float32)                    # (C, C)
    bv2 = bv.reshape(C, 1).astype(jnp.float32)
    gamma1 = gamma.reshape(1).astype(jnp.float32)

    # Keep the whole (C, N) bf16 kv slab resident per batch when it fits VMEM.
    kv_slab_bytes = 2 * C * N * 2                  # double-buffered bf16 slab
    resident_budget = (12 << 20) if gen >= 7 else (28 << 20)
    if resident_kv is None:
        resident_kv = kv_slab_bytes <= resident_budget

    grid = (B, N // tq, N // tk)

    if resident_kv:
        kv_spec = pl.BlockSpec((None, C, N), lambda b, qi, ki: (b, 0, 0))
        kv_vmem = kv_slab_bytes
        kv_stream_bytes = B * C * N * 2
    else:
        kv_map = lambda b, qi, ki: (b, 0, ki)
        kv_kwargs = {}
        if hasattr(pl, "Buffered"):
            kv_kwargs = {"pipeline_mode": pl.Buffered(3)}   # hide per-step kv DMA
        try:
            kv_spec = pl.BlockSpec((None, C, tk), kv_map, **kv_kwargs)
        except TypeError:
            kv_spec = pl.BlockSpec((None, C, tk), kv_map)
        kv_vmem = 3 * C * tk * 2
        kv_stream_bytes = B * (N // tq) * C * N * 2

    # VMEM budget: double-buffered xq/out tiles + kv + weights + scratch +
    # the (tk, tq) energy/p temporaries, 2x headroom, generation-aware cap.
    est_bytes = (2 * C * tq * 4                    # xq (double-buffered)
                 + 2 * C * tq * 4                  # out (double-buffered)
                 + kv_vmem
                 + (2 * C * C + 2 * C) * 4         # Mt, Wv, u, bv
                 + C * tq * 2 + 2 * tq * 4 + C * tq * 4   # qhat / m / l / acc scratch
                 + 3 * tk * tq * 4)                # energy / p temporaries
    cap = int(0.75 * vmem_cap)
    vmem_limit = int(min(cap, max(16 << 20, 2 * est_bytes)))

    cost = pl.CostEstimate(
        flops=int(4 * B * N * N * C + 4 * B * N * C * C),
        transcendentals=int(B * N * N),
        bytes_accessed=int(B * C * N * 4          # xq stream
                           + kv_stream_bytes      # kv stream
                           + B * C * N * 4        # output
                           + 2 * C * C * 4))      # weights

    kernel = functools.partial(self_attn_kernel, tk=tk,
                               resident_kv=resident_kv, bf16_exp=bf16_exp)

    out_bcn = pl.pallas_call(
        kernel,
        out_shape=jax.ShapeDtypeStruct((B, C, N), x_bcn.dtype),
        grid=grid,
        in_specs=[
            pl.BlockSpec((None, C, tq), lambda b, qi, ki: (b, 0, qi)),   # x, query view (f32)
            kv_spec,                                                      # x, kv view (bf16)
            pl.BlockSpec((C, C), lambda b, qi, ki: (0, 0)),               # Mt
            pl.BlockSpec((C, 1), lambda b, qi, ki: (0, 0)),               # u
            pl.BlockSpec((C, C), lambda b, qi, ki: (0, 0)),               # Wv
            pl.BlockSpec((C, 1), lambda b, qi, ki: (0, 0)),               # bv
            pl.BlockSpec(memory_space=pltpu.MemorySpace.SMEM),            # gamma
        ],
        out_specs=pl.BlockSpec((None, C, tq), lambda b, qi, ki: (b, 0, qi)),
        scratch_shapes=[
            pltpu.VMEM((C, tq), jnp.bfloat16),   # qhat
            pltpu.VMEM((1, tq), jnp.float32),    # running max
            pltpu.VMEM((1, tq), jnp.float32),    # running sum
            pltpu.VMEM((C, tq), jnp.float32),    # un-normalized context accumulator
        ],
        compiler_params=pltpu.CompilerParams(
            dimension_semantics=("parallel", "parallel", "arbitrary"),
            vmem_limit_bytes=vmem_limit),
        cost_estimate=cost,
    )(x_bcn, x_kv_bf16, Mt, u, wv, bv2, gamma1)

    return out_bcn.reshape(B, C, W, H)


def ref_forward(x, Wq, bq, Wk, bk, Wv, bv, gamma):
    """Plain-JAX reference mirroring the PyTorch forward exactly (f32)."""
    B, C, W, H = x.shape
    N = W * H
    xf = x.reshape(B, C, N)
    q = jnp.einsum('oc,bcn->bon', Wq, xf) + bq[None, :, None]            # (B, C8, N)
    k = jnp.einsum('oc,bcn->bon', Wk, xf) + bk[None, :, None]            # (B, C8, N)
    v = jnp.einsum('oc,bcn->bon', Wv, xf) + bv[None, :, None]            # (B, C, N)
    energy = jnp.einsum('bcn,bcm->bnm', q, k)                            # (B, N, N)
    attn = jax.nn.softmax(energy, axis=-1)
    out = jnp.einsum('bcm,bnm->bcn', v, attn)                            # bmm(v, attn^T)
    out = out.reshape(B, C, W, H)
    return gamma * out + x


if __name__ == "__main__":
    # in_dim=16 so query/key channels = in_dim // 8 = 2; W=H=16 -> N=256.
    B, C, W, H = 2, 16, 16, 16
    C8 = C // 8

    key = jax.random.PRNGKey(0)
    kx, kq, kk, kv, kbq, kbk, kbv = jax.random.split(key, 7)

    x = jax.random.normal(kx, (B, C, W, H), dtype=jnp.float32)

    # Conv2d 1x1 weights, torch layout (Cout, Cin) after squeezing the 1x1 kernel.
    Wq = jax.random.normal(kq, (C8, C), dtype=jnp.float32) * 0.1
    Wk = jax.random.normal(kk, (C8, C), dtype=jnp.float32) * 0.1
    Wv = jax.random.normal(kv, (C, C), dtype=jnp.float32) * 0.1
    bq = jax.random.normal(kbq, (C8,), dtype=jnp.float32) * 0.1
    bk = jax.random.normal(kbk, (C8,), dtype=jnp.float32) * 0.1
    bv = jax.random.normal(kbv, (C,), dtype=jnp.float32) * 0.1
    # gamma is zero-initialized in the torch module (output == x); use a nonzero
    # deterministic value so the attention path is actually exercised.
    gamma = jnp.array([0.5], dtype=jnp.float32)

    ref = ref_forward(x, Wq, bq, Wk, bk, Wv, bv, gamma)

    # 1) 128-wide tiles: exercises the online-softmax kv loop over the resident slab.
    out_small = self_attn_pallas(x, Wq, bq, Wk, bk, Wv, bv, gamma, tq=128, tk=128)
    out_small = jax.block_until_ready(out_small)
    assert out_small.shape == (B, C, W, H)
    assert jnp.allclose(out_small, ref, atol=2e-2, rtol=1e-2), (
        float(jnp.max(jnp.abs(out_small - ref))))

    # 2) Default (largest) tiles with auto resident-kv selection.
    out_default = self_attn_pallas(x, Wq, bq, Wk, bk, Wv, bv, gamma)
    out_default = jax.block_until_ready(out_default)
    assert jnp.allclose(out_default, ref, atol=2e-2, rtol=1e-2), (
        float(jnp.max(jnp.abs(out_default - ref))))

    # 3) Tiled (non-resident) kv fallback path with deeper buffering.
    out_tiled = self_attn_pallas(x, Wq, bq, Wk, bk, Wv, bv, gamma,
                                 tq=128, tk=128, resident_kv=False)
    out_tiled = jax.block_until_ready(out_tiled)
    assert jnp.allclose(out_tiled, ref, atol=2e-2, rtol=1e-2), (
        float(jnp.max(jnp.abs(out_tiled - ref))))

    print("KERNEL_OK")
</pallas_src>

<mosaic_0001>
module attributes {stable_mosaic.version = 11 : i64} {
  func.func @self_attn_kernel(%arg0: i32, %arg1: i32, %arg2: i32, %arg3: memref<1x16x128xf32, #tpu.memory_space<vmem>>, %arg4: memref<1x16x256xbf16, #tpu.memory_space<vmem>>, %arg5: memref<16x16xf32, #tpu.memory_space<vmem>>, %arg6: memref<16x1xf32, #tpu.memory_space<vmem>>, %arg7: memref<16x16xf32, #tpu.memory_space<vmem>>, %arg8: memref<16x1xf32, #tpu.memory_space<vmem>>, %arg9: memref<1xf32, #tpu.memory_space<smem>>, %arg10: memref<1x16x128xf32, #tpu.memory_space<vmem>>, %arg11: memref<16x128xbf16, #tpu.memory_space<vmem>>, %arg12: memref<1x128xf32, #tpu.memory_space<vmem>>, %arg13: memref<1x128xf32, #tpu.memory_space<vmem>>, %arg14: memref<16x128xf32, #tpu.memory_space<vmem>>) attributes {dimension_semantics = [#tpu.dimension_semantics<parallel>, #tpu.dimension_semantics<parallel>, #tpu.dimension_semantics<arbitrary>], iteration_bounds = array<i64: 2, 2, 2>, scalar_prefetch = 0 : i64, scratch_operands = 4 : i64, tpu.core_type = #tpu.core_type<tc>, window_params = [{transform_indices = @transform_0, window_bounds = array<i64: 1, 16, 128>}, {transform_indices = @transform_1, window_bounds = array<i64: 1, 16, 256>}, {pipeline_mode = #tpu.pipeline_mode<synchronous>, transform_indices = @transform_2, window_bounds = array<i64: 16, 16>}, {pipeline_mode = #tpu.pipeline_mode<synchronous>, transform_indices = @transform_3, window_bounds = array<i64: 16, 1>}, {pipeline_mode = #tpu.pipeline_mode<synchronous>, transform_indices = @transform_4, window_bounds = array<i64: 16, 16>}, {pipeline_mode = #tpu.pipeline_mode<synchronous>, transform_indices = @transform_5, window_bounds = array<i64: 16, 1>}, {transform_indices = @transform_6, window_bounds = array<i64: 1>}, {transform_indices = @transform_7, window_bounds = array<i64: 1, 16, 128>}]} {
    %c0_i32 = arith.constant 0 : i32
    %0 = arith.cmpi eq, %arg2, %c0_i32 : i32
    %1 = arith.extui %0 : i1 to i32
    %c0_i32_0 = arith.constant 0 : i32
    %2 = arith.cmpi ne, %1, %c0_i32_0 : i32
    scf.if %2 {
      %c0_20 = arith.constant 0 : index
      %c0_21 = arith.constant 0 : index
      %c0_22 = arith.constant 0 : index
      %36 = vector.load %arg3[%c0_20, %c0_21, %c0_22] : memref<1x16x128xf32, #tpu.memory_space<vmem>>, vector<1x16x128xf32>
      %37 = vector.shape_cast %36 : vector<1x16x128xf32> to vector<16x128xf32>
      %c0_23 = arith.constant 0 : index
      %c0_24 = arith.constant 0 : index
      %38 = vector.load %arg5[%c0_23, %c0_24] : memref<16x16xf32, #tpu.memory_space<vmem>>, vector<16x16xf32>
      %cst_25 = arith.constant dense<0.000000e+00> : vector<16x128xf32>
      %39 = tpu.matmul %38, %37, %cst_25 {dimension_numbers = #tpu.dot_dimension_numbers<[1], [0], [0], [1], [0, 0, 1, 1], [], []>} : vector<16x16xf32>, vector<16x128xf32>, vector<16x128xf32> -> vector<16x128xf32>
      %c0_26 = arith.constant 0 : index
      %c0_27 = arith.constant 0 : index
      %40 = vector.load %arg6[%c0_26, %c0_27] : memref<16x1xf32, #tpu.memory_space<vmem>>, vector<16x1xf32>
      %41 = vector.broadcast %40 : vector<16x1xf32> to vector<16x128xf32>
      %42 = arith.addf %39, %41 : vector<16x128xf32>
      %43 = arith.truncf %42 : vector<16x128xf32> to vector<16x128xbf16>
      %c0_28 = arith.constant 0 : index
      %c0_29 = arith.constant 0 : index
      %44 = vector.load %arg11[%c0_28, %c0_29] : memref<16x128xbf16, #tpu.memory_space<vmem>>, vector<16x128xbf16>
      tpu.vector_store %arg11[%c0_28, %c0_29], %43 {strides = array<i32>} : memref<16x128xbf16, #tpu.memory_space<vmem>>, vector<16x128xbf16>,
      %cst_30 = arith.constant 0xFF800000 : f32
      %45 = vector.broadcast %cst_30 : f32 to vector<1x128xf32>
      %c0_31 = arith.constant 0 : index
      %c0_32 = arith.constant 0 : index
      %46 = vector.load %arg12[%c0_31, %c0_32] : memref<1x128xf32, #tpu.memory_space<vmem>>, vector<1x128xf32>
      tpu.vector_store %arg12[%c0_31, %c0_32], %45 {strides = array<i32>} : memref<1x128xf32, #tpu.memory_space<vmem>>, vector<1x128xf32>,
      %cst_33 = arith.constant 0.000000e+00 : f32
      %47 = vector.broadcast %cst_33 : f32 to vector<1x128xf32>
      %c0_34 = arith.constant 0 : index
      %c0_35 = arith.constant 0 : index
      %48 = vector.load %arg13[%c0_34, %c0_35] : memref<1x128xf32, #tpu.memory_space<vmem>>, vector<1x128xf32>
      tpu.vector_store %arg13[%c0_34, %c0_35], %47 {strides = array<i32>} : memref<1x128xf32, #tpu.memory_space<vmem>>, vector<1x128xf32>,
      %cst_36 = arith.constant 0.000000e+00 : f32
      %49 = vector.broadcast %cst_36 : f32 to vector<16x128xf32>
      %c0_37 = arith.constant 0 : index
      %c0_38 = arith.constant 0 : index
      %50 = vector.load %arg14[%c0_37, %c0_38] : memref<16x128xf32, #tpu.memory_space<vmem>>, vector<16x128xf32>
      tpu.vector_store %arg14[%c0_37, %c0_38], %49 {strides = array<i32>} : memref<16x128xf32, #tpu.memory_space<vmem>>, vector<16x128xf32>,
    } else {
    }
    %c128_i32 = arith.constant 128 : i32
    %3 = arith.muli %arg2, %c128_i32 : i32
    %4 = tpu.assume_multiple %3, 128 : i32
    %c0 = arith.constant 0 : index
    %c0_1 = arith.constant 0 : index
    %5 = arith.index_cast %4 : i32 to index
    %6 = vector.load %arg4[%c0, %c0_1, %5] : memref<1x16x256xbf16, #tpu.memory_space<vmem>>, vector<1x16x128xbf16>
    %7 = vector.shape_cast %6 : vector<1x16x128xbf16> to vector<16x128xbf16>
    %c0_2 = arith.constant 0 : index
    %c0_3 = arith.constant 0 : index
    %8 = vector.load %arg11[%c0_2, %c0_3] : memref<16x128xbf16, #tpu.memory_space<vmem>>, vector<16x128xbf16>
    %cst = arith.constant dense<0.000000e+00> : vector<128x128xf32>
    %9 = tpu.matmul %7, %8, %cst {dimension_numbers = #tpu.dot_dimension_numbers<[0], [0], [1], [1], [0, 1, 1, 1], [], []>} : vector<16x128xbf16>, vector<16x128xbf16>, vector<128x128xf32> -> vector<128x128xf32>
    %c0_4 = arith.constant 0 : index
    %c0_5 = arith.constant 0 : index
    %10 = vector.load %arg12[%c0_4, %c0_5] : memref<1x128xf32, #tpu.memory_space<vmem>>, vector<1x128xf32>
    %cst_6 = arith.constant dense<0xFF800000> : vector<128xf32>
    %11 = vector.multi_reduction <maximumf>, %9, %cst_6 [0] : vector<128x128xf32> to vector<128xf32>
    %12 = vector.shape_cast %11 : vector<128xf32> to vector<1x128xf32>
    %13 = arith.maximumf %10, %12 : vector<1x128xf32>
    %14 = arith.subf %10, %13 : vector<1x128xf32>
    %15 = math.exp %14 : vector<1x128xf32>
    %16 = vector.broadcast %13 : vector<1x128xf32> to vector<128x128xf32>
    %17 = arith.subf %9, %16 : vector<128x128xf32>
    %18 = math.exp %17 : vector<128x128xf32>
    %cst_7 = arith.constant dense<0.000000e+00> : vector<128xf32>
    %19 = vector.multi_reduction <add>, %18, %cst_7 [0] : vector<128x128xf32> to vector<128xf32>
    %20 = vector.shape_cast %19 : vector<128xf32> to vector<1x128xf32>
    %21 = arith.truncf %18 : vector<128x128xf32> to vector<128x128xbf16>
    %c0_8 = arith.constant 0 : index
    %c0_9 = arith.constant 0 : index
    %22 = vector.load %arg13[%c0_8, %c0_9] : memref<1x128xf32, #tpu.memory_space<vmem>>, vector<1x128xf32>
    %23 = arith.mulf %15, %22 : vector<1x128xf32>
    %24 = arith.addf %23, %20 : vector<1x128xf32>
    %c0_10 = arith.constant 0 : index
    %c0_11 = arith.constant 0 : index
    %25 = vector.load %arg13[%c0_10, %c0_11] : memref<1x128xf32, #tpu.memory_space<vmem>>, vector<1x128xf32>
    tpu.vector_store %arg13[%c0_10, %c0_11], %24 {strides = array<i32>} : memref<1x128xf32, #tpu.memory_space<vmem>>, vector<1x128xf32>,
    %c0_12 = arith.constant 0 : index
    %c0_13 = arith.constant 0 : index
    %26 = vector.load %arg14[%c0_12, %c0_13] : memref<16x128xf32, #tpu.memory_space<vmem>>, vector<16x128xf32>
    %27 = vector.broadcast %15 : vector<1x128xf32> to vector<16x128xf32>
    %28 = arith.mulf %27, %26 : vector<16x128xf32>
    %cst_14 = arith.constant dense<0.000000e+00> : vector<16x128xf32>
    %29 = tpu.matmul %7, %21, %cst_14 {dimension_numbers = #tpu.dot_dimension_numbers<[1], [0], [0], [1], [0, 0, 1, 1], [], []>} : vector<16x128xbf16>, vector<128x128xbf16>, vector<16x128xf32> -> vector<16x128xf32>
    %30 = arith.addf %28, %29 : vector<16x128xf32>
    %c0_15 = arith.constant 0 : index
    %c0_16 = arith.constant 0 : index
    %31 = vector.load %arg14[%c0_15, %c0_16] : memref<16x128xf32, #tpu.memory_space<vmem>>, vector<16x128xf32>
    tpu.vector_store %arg14[%c0_15, %c0_16], %30 {strides = array<i32>} : memref<16x128xf32, #tpu.memory_space<vmem>>, vector<16x128xf32>,
    %c0_17 = arith.constant 0 : index
    %c0_18 = arith.constant 0 : index
    %32 = vector.load %arg12[%c0_17, %c0_18] : memref<1x128xf32, #tpu.memory_space<vmem>>, vector<1x128xf32>
    tpu.vector_store %arg12[%c0_17, %c0_18], %13 {strides = array<i32>} : memref<1x128xf32, #tpu.memory_space<vmem>>, vector<1x128xf32>,
    %c1_i32 = arith.constant 1 : i32
    %33 = arith.cmpi eq, %arg2, %c1_i32 : i32
    %34 = arith.extui %33 : i1 to i32
    %c0_i32_19 = arith.constant 0 : i32
    %35 = arith.cmpi ne, %34, %c0_i32_19 : i32
    scf.if %35 {
      %c0_20 = arith.constant 0 : index
      %c0_21 = arith.constant 0 : index
      %36 = vector.load %arg13[%c0_20, %c0_21] : memref<1x128xf32, #tpu.memory_space<vmem>>, vector<1x128xf32>
      %37 = tpu.reciprocal %36 {approx = true} : vector<1x128xf32> -> vector<1x128xf32>
      %c0_22 = arith.constant 0 : index
      %c0_23 = arith.constant 0 : index
      %38 = vector.load %arg14[%c0_22, %c0_23] : memref<16x128xf32, #tpu.memory_space<vmem>>, vector<16x128xf32>
      %39 = vector.broadcast %37 : vector<1x128xf32> to vector<16x128xf32>
      %40 = arith.mulf %38, %39 : vector<16x128xf32>
      %c0_24 = arith.constant 0 : index
      %c0_25 = arith.constant 0 : index
      %41 = vector.load %arg7[%c0_24, %c0_25] : memref<16x16xf32, #tpu.memory_space<vmem>>, vector<16x16xf32>
      %cst_26 = arith.constant dense<0.000000e+00> : vector<16x128xf32>
      %42 = tpu.matmul %41, %40, %cst_26 {dimension_numbers = #tpu.dot_dimension_numbers<[1], [0], [0], [1], [0, 0, 1, 1], [], []>} : vector<16x16xf32>, vector<16x128xf32>, vector<16x128xf32> -> vector<16x128xf32>
      %c0_27 = arith.constant 0 : index
      %c0_28 = arith.constant 0 : index
      %43 = vector.load %arg8[%c0_27, %c0_28] : memref<16x1xf32, #tpu.memory_space<vmem>>, vector<16x1xf32>
      %44 = vector.broadcast %43 : vector<16x1xf32> to vector<16x128xf32>
      %45 = arith.addf %42, %44 : vector<16x128xf32>
      %c0_29 = arith.constant 0 : index
      %46 = memref.load %arg9[%c0_29] : memref<1xf32, #tpu.memory_space<smem>>
      %47 = vector.broadcast %46 : f32 to vector<16x128xf32>
      %48 = arith.mulf %47, %45 : vector<16x128xf32>
      %c0_30 = arith.constant 0 : index
      %c0_31 = arith.constant 0 : index
      %c0_32 = arith.constant 0 : index
      %49 = vector.load %arg3[%c0_30, %c0_31, %c0_32] : memref<1x16x128xf32, #tpu.memory_space<vmem>>, vector<1x16x128xf32>
      %50 = vector.shape_cast %49 : vector<1x16x128xf32> to vector<16x128xf32>
      %51 = arith.addf %48, %50 : vector<16x128xf32>
      %c0_33 = arith.constant 0 : index
      %c0_34 = arith.constant 0 : index
      %c0_35 = arith.constant 0 : index
      %52 = vector.load %arg10[%c0_33, %c0_34, %c0_35] : memref<1x16x128xf32, #tpu.memory_space<vmem>>, vector<1x16x128xf32>
      %53 = vector.shape_cast %52 : vector<1x16x128xf32> to vector<16x128xf32>
      %54 = vector.shape_cast %51 : vector<16x128xf32> to vector<1x16x128xf32>
      tpu.vector_store %arg10[%c0_33, %c0_34, %c0_35], %54 {strides = array<i32>} : memref<1x16x128xf32, #tpu.memory_space<vmem>>, vector<1x16x128xf32>,
    } else {
    }
    return
  }
  func.func @transform_0(%arg0: i32, %arg1: i32, %arg2: i32) -> (i32, i32, i32) {
    %c0_i32 = arith.constant 0 : i32
    %c0_i32_0 = arith.constant 0 : i32
    return %arg0, %c0_i32, %arg1 : i32, i32, i32
  }
  func.func @transform_1(%arg0: i32, %arg1: i32, %arg2: i32) -> (i32, i32, i32) {
    %c0_i32 = arith.constant 0 : i32
    %c0_i32_0 = arith.constant 0 : i32
    %c0_i32_1 = arith.constant 0 : i32
    return %arg0, %c0_i32, %c0_i32_0 : i32, i32, i32
  }
  func.func @transform_2(%arg0: i32, %arg1: i32, %arg2: i32) -> (i32, i32) {
    %c0_i32 = arith.constant 0 : i32
    %c0_i32_0 = arith.constant 0 : i32
    %c0_i32_1 = arith.constant 0 : i32
    return %c0_i32, %c0_i32_0 : i32, i32
  }
  func.func @transform_3(%arg0: i32, %arg1: i32, %arg2: i32) -> (i32, i32) {
    %c0_i32 = arith.constant 0 : i32
    %c0_i32_0 = arith.constant 0 : i32
    %c0_i32_1 = arith.constant 0 : i32
    return %c0_i32, %c0_i32_0 : i32, i32
  }
  func.func @transform_4(%arg0: i32, %arg1: i32, %arg2: i32) -> (i32, i32) {
    %c0_i32 = arith.constant 0 : i32
    %c0_i32_0 = arith.constant 0 : i32
    %c0_i32_1 = arith.constant 0 : i32
    return %c0_i32, %c0_i32_0 : i32, i32
  }
  func.func @transform_5(%arg0: i32, %arg1: i32, %arg2: i32) -> (i32, i32) {
    %c0_i32 = arith.constant 0 : i32
    %c0_i32_0 = arith.constant 0 : i32
    %c0_i32_1 = arith.constant 0 : i32
    return %c0_i32, %c0_i32_0 : i32, i32
  }
  func.func @transform_6(%arg0: i32, %arg1: i32, %arg2: i32) -> i32 {
    %c0_i32 = arith.constant 0 : i32
    %c0_i32_0 = arith.constant 0 : i32
    return %c0_i32 : i32
  }
  func.func @transform_7(%arg0: i32, %arg1: i32, %arg2: i32) -> (i32, i32, i32) {
    %c0_i32 = arith.constant 0 : i32
    %c0_i32_0 = arith.constant 0 : i32
    return %arg0, %c0_i32, %arg1 : i32, i32, i32
  }
}

</mosaic_0001>

<bundles_post_ra>
// kernel: tpu_custom_call.1
= control target key start
LH: loop header
LB: loop body
LE: loop exit
PB: predicated region body
PF: predicated region fallthrough
CT: control target
= control target key end

     0   :  { %s1985_s0 = inlined_call_operand.hbm [shape: f32[2,16,256], index: 0, kind: input, shape index: {}]   ;;  %s1986_s1 = inlined_call_operand.vmem [shape: bf16[2,16,256], index: 1, kind: input, shape index: {}]   ;;  %s1987_s2 = inlined_call_operand.hbm [shape: f32[16,16], index: 2, kind: input, shape index: {}]   ;;  %s1988_s3 = inlined_call_operand.vmem [shape: f32[16,1], index: 3, kind: input, shape index: {}]   ;;  %s1989_s4 = inlined_call_operand.hbm [shape: f32[16,16], index: 4, kind: input, shape index: {}]   ;;  %s1990_s5 = inlined_call_operand.vmem [shape: f32[16,1], index: 5, kind: input, shape index: {}]   ;;  %s1991_s6 = inlined_call_operand.<no memory space> [shape: f32[1], index: 6, kind: input, shape index: {}]   ;;  %s1992_s7 = inlined_call_operand.hbm [shape: f32[2,16,256], index: 7, kind: output, shape index: {}]  }
   0x1   :  { %2004 = sst [smem:[#allocation23_spill]] %s1985_s0 }
   0x2   :  { %2005 = sst [smem:[#allocation24_spill]] %s1987_s2 }
   0x3   :  { %2006 = sst [smem:[#allocation25_spill]] %s1989_s4 }
   0x4   :  { %12 = sst [smem:[#allocation6]] %s1991_s6 }
   0x5   :  { %13 = vsyncpa [#allocation8], 0 }
   0x6   :  { %15 = vsyncpa [#allocation8 + $0x1], 0 }
   0x7   :  { %16 = vsyncpa [#allocation11], 0 }
   0x8   :  { %17 = vsyncpa [#allocation9], 0 }
   0x9   :  { %19 = vsyncpa [#allocation9 + $0x1], 0  ;;  %s1631_s26 = smov 0   ;;  %s1633_s27 = smov 0  }
   0xa   :  { %s1635_s28 = smov 0   ;;  %s1637_s29 = smov 0  }
   0xb   :  { %s1639_s30 = smov 0   ;;  %s1641_s8 = smov 0  }
   0xc   :  { %s1643_s9 = smov 0   ;;  %s1645_s6 = smov 0  }
   0xd   :  { %s1647_s10 = smov 0   ;;  %s1649_s11 = smov 0  }
   0xe LB: > { %2007 = sst [smem:[#allocation17_spill]] %s1534_s26  ;;  %s1079_s12 = sadd.s32 4294967295, %s1570_s11   ;;  %s1570_s11 = sphi %s1649_s11, %s25_s11   ;;  %s1566_s10 = sphi %s1647_s10, %s2041_s10   ;;  %s1562_s6 = sphi %s1645_s6, %s2040_s6   ;;  %s1558_s9 = sphi %s1643_s9, %s2033_s9   ;;  %s1554_s8 = sphi %s1641_s8, %s2039_s8   ;;  %s1550_s30 = sphi %s1639_s30, %s2038_s30   ;;  %s1546_s29 = sphi %s1637_s29, %s2032_s29   ;;  %s1542_s28 = sphi %s1635_s28, %s2037_s28   ;;  %s1538_s27 = sphi %s1633_s27, %s2036_s27   ;;  %s1534_s26 = sphi %s1631_s26, %s2035_s26  }
   0xf   : > { %2008 = sst [smem:[#allocation18_spill]] %s1558_s9  ;;  %s1080_s13 = sadd.s32 4294967294, %s1570_s11  }
  0x10   : > { %2009 = sst [smem:[#allocation19_spill]] %s1570_s11  ;;  %p60_p0 = scmp.ne.s32.totalorder %s1542_s28, %s1538_s27 }
  0x11   : > { %p61_p1 = scmp.eq.s32.totalorder %s1570_s11, 0  ;;  %p66_p2 = scmp.ne.s32.totalorder %s1538_s27, %s1534_s26 }
  0x12   : > { %p1688_p3 = scmp.eq.s32.totalorder %s1079_s12, 0  ;;  %p223_p4 = scmp.eq.s32.totalorder %s1079_s12, 7 }
  0x13   : > { %p1692_p5 = por %p61_p1, %p60_p0  ;;  %p229_p6 = scmp.eq.s32.totalorder %s1080_s13, 7 }
  0x14   : > { %s2010_s14 = scalar_select %p1688_p3, 1, 0 }
  0x15   : > { %p1698_p7 = por %p1688_p3, %p66_p2  ;;  %p1702_p8 = por %p223_p4, %p60_p0 }
  0x16   : > { %p1706_p9 = por %p229_p6, %p66_p2  ;;  %p1081_p10 = scmp.ge.s32.totalorder %s1570_s11, 1 }
  0x17   : > { %s2013_s17 = scalar_select %p1702_p8, 1, 0 }
  0x18   : > { %s2014_s18 = scalar_select %p1706_p9, 1, 0 }
  0x19   : > { %p236_p11 = scmp.lt.s32.totalorder %s1570_s11, 9  ;;  %s1572_s20 = smov [#allocation10]  }
  0x1a   : > { %2015 = sst [smem:[#allocation20_spill]] %s2014_s18  ;;  %s248_s21 = sshll.u32 %s1572_s20, 4  ;;  %s249_s21 = int_to_ptr.vmem [resolvable:$true] %s248_s21 }
  0x1b   : > { %p1712_p12 = pnand %p1081_p10, %p236_p11  ;;  %p1235_p0 = scmp.lt.s32.totalorder %s1570_s11, 8 }
  0x1c   : > { %s1573_s23 = smov [#allocation12]   ;;  %s1385_s12 = scalar_lea.vmem %s249_s21, 256 }
  0x1d   : > { %p1218_p13 = pneg %p1712_p12  ;;  %s264_s24 = sshll.u32 %s1573_s23, 4  ;;  %s265_s24 = int_to_ptr.vmem [resolvable:$true] %s264_s24 }
  0x1e   : > { %p1727_p2 = pnand %p1235_p0, %p1692_p5  ;;  %p1386_p6 = scmp.ne.s32.totalorder %s249_s21, %s1385_s12 }
  0x1f   : > { %p1721_p1 = pnand %p1218_p13, %p1688_p3  ;;  %p1393_p13 = scmp.lt.s32.totalorder %s249_s21, %s249_s21 }
  0x20   : > { %p1394_p9 = scmp.lt.s32.totalorder %s1385_s12, %s1385_s12 }
  0x21   : > { %p1376_p4 = pneg %p1721_p1 }
  0x22   : > { %p1395_p8 = por %p1394_p9, %p1393_p13 }
  0x23   : > { %p1388_p10 = pnand %p1386_p6, %p1376_p4 }
  0x25   : > { %p1389_p11 = pneg %p1388_p10 }
  0x27   : > { %p1396_p3 = pnand %p1395_p8, %p1389_p11 }
  0x29   : > { %1399 = shalt.err (!%p1396_p3)
}
  0x2a   : > { %s2000_s13 = smov 128   ;;  %s2001_s15 = smov 8  }
  0x2b   : > { %s2019_s2 = sld [smem:[#allocation24_spill]]  ;;  %s1411_s18 = scalar_lea.vmem %s265_s24, 256 }
  0x2c   : > { %p1412_p5 = scmp.ne.s32.totalorder %s265_s24, %s1411_s18  ;;  %p1419_p8 = scmp.lt.s32.totalorder %s265_s24, %s265_s24 }
  0x2d   : > { %p1420_p3 = scmp.lt.s32.totalorder %s1411_s18, %s1411_s18 }
  0x2e   : > { %p1414_p0 = pnand %p1412_p5, %p1376_p4 }
  0x2f   : > { %p1421_p6 = por %p1420_p3, %p1419_p8 }
  0x30   : > { %p1415_p9 = pneg %p1414_p0 }
  0x31   : > { %1221 = dma.hbm_to_vmem [thread:$0]  (!%p1721_p1), %s2019_s2, 256, %s249_s21, [#allocation11], %s2000_s13, %s2000_s13, %s2001_s15  }
  0x32   : > { %p1422_p10 = pnand %p1421_p6, %p1415_p9 }
  0x34   : > { %1425 = shalt.err (!%p1422_p10)
}
  0x35   : > { %s2020_s4 = sld [smem:[#allocation25_spill]]  ;;  %s37_s18 = sadd.s32 1, %s1558_s9 }
  0x36   : > { %s40_s21 = sadd.s32 1, %s1562_s6  ;;  %p38_p4 = scmp.ge.s32.totalorder %s37_s18, 2 }
  0x37   : > { %s44_s22 = sadd.s32 1, %s1566_s10  ;;  %s284_s20 = sand.u32 1, %s1542_s28  }
  0x38   : > { %s1086_s23 = sshll.u32 %s1566_s10, 2  ;;  %s2043_s18 = smov (%p38_p4, %s37_s18), 0 }
  0x39   : > { %2021 = sst [smem:[#allocation21_spill]] %s2043_s18  ;;  %s2045_s21 = smov (!%p38_p4, %s40_s21), %s1562_s6 }
  0x3a   : > { %s1085_s26 = sshll.u32 %s284_s20, 4  ;;  %p42_p11 = scmp.ge.s32.totalorder %s2045_s21, 2 }
  0x3b   : > { %1224 = dma.hbm_to_vmem [thread:$0]  (!%p1721_p1), %s2020_s4, 256, %s265_s24, [#allocation11], %s2000_s13, %s2000_s13, %s2001_s15  }
  0x3c   : > { %s293_s12 = sadd.s32 %s1562_s6, %s1086_s23  ;;  %s288_s2 = scalar_lea.vmem [#allocation7], %s1085_s26 }
  0x3d   : > { %s296_s11 = sshll.u32 %s288_s2, 4  ;;  %s2047_s21 = smov (%p42_p11, %s2045_s21), 0  ;;  %s297_s11 = int_to_ptr.vmem [resolvable:$true] %s296_s11 }
  0x3e   : > { %2022 = sst [smem:[#allocation22_spill]] %s2047_s21  ;;  %s2049_s22 = smov (!%p42_p11, %s44_s22), %s1566_s10 }
  0x3f   : > { %s49_s24 = ssub.s32 %s1562_s6, %s2047_s21  ;;  %s1087_s13 = sshll.u32 %s293_s12, 7 }
  0x40   : > { %p46_p1 = scmp.ge.s32.totalorder %s2049_s22, 2  ;;  %s2023_s0 = sld [smem:[#allocation23_spill]] }
  0x41   : > { %s285_s18 = scalar_lea.sflag [#allocation8], %s284_s20  ;;  %p1428_p13 = pneg %p1727_p2 }
  0x42   : > { %s2051_s22 = smov (%p46_p1, %s2049_s22), 0  ;;  %s1439_s23 = scalar_lea.vmem %s297_s11, 256 }
  0x43   : > { %p1440_p5 = scmp.ne.s32.totalorder %s297_s11, %s1439_s23  ;;  %s1576_s2 = smov [#allocation7]  }
  0x44   : > { %s1444_s26 = sshll.u32 %s1576_s2, 4  ;;  %s1445_s26 = int_to_ptr.vmem [resolvable:$false] %s1444_s26 }
  0x45   : > { %p1442_p0 = pnand %p1440_p5, %p1428_p13  ;;  %s1446_s21 = scalar_lea.vmem %s1445_s26, 512 }
  0x46   : > { %s295_s9 = scalar_lea.hbm %s2023_s0, %s1087_s13  ;;  %p1447_p8 = scmp.lt.s32.totalorder %s297_s11, %s1445_s26 }
  0x47   : > { %p1443_p9 = pneg %p1442_p0  ;;  %p1448_p3 = scmp.lt.s32.totalorder %s1446_s21, %s1439_s23 }
  0x49   : > { %p1449_p6 = por %p1448_p3, %p1447_p8 }
  0x4b   : > { %p1450_p10 = pnand %p1449_p6, %p1443_p9 }
  0x4d   : > { %1453 = shalt.err (!%p1450_p10)
}
  0x4e   : > { %s1577_s4 = smov 256   ;;  %s2024_s13 = smov 8  }
  0x4f   : > { %s2025_s15 = smov 128   ;;  %s48_s20 = ssub.s32 %s1566_s10, %s2051_s22 }
  0x50   : > { %1228 = dma.hbm_to_vmem [thread:$0]  (!%p1727_p2), %s295_s9, 256, %s297_s11, %s285_s18, %s1577_s4, %s2025_s15, %s2024_s13  }
  0x51   : > { %s53_s12 = sadd.s32 1, %s1542_s28  ;;  %s50_s2 = sor.u32 %s49_s24, %s48_s20 }
  0x52   : > { %p51_p4 = scmp.eq.s32.totalorder %s50_s2, 0  ;;  %316 = sbr.rel (%p1712_p12) target bundleno = 1171 (0x493), region = 48 }
  0x53   : > { %s1789_s21 = sand.u32 (!%p1712_p12), 1, %s1538_s27  }
  0x54   : > { %s1784_s0 = scalar_select %p51_p4, %s1542_s28, %s53_s12  }
  0x55   : > { %s1089_s25 = sshll.u32 (!%p1712_p12), %s1789_s21, 4  ;;  %s319_s23 = scalar_lea.sflag (!%p1712_p12), [#allocation8], %s1789_s21 }
  0x56   : > { %s1793_s26 = scalar_lea.vmem (!%p1712_p12), [#allocation7], %s1089_s25 }
  0x57   : > { %1521 = dma.done.wait (%p1698_p7), %s319_s23, 256  }
  0x58   : > { %1523 = vsyncadd (%p1698_p7), %s319_s23, 4294967040  ;;  %p2026_p2 = scmp.ne.s32.totalorder %s2010_s14, 0 }
  0x5a   : > { %1525 = dma.done.wait (%p2026_p2), [#allocation11], 512  }
  0x5b   : > { %1527 = vsyncadd (%p2026_p2), [#allocation11], 4294966784  ;;  %p366_p12 = scmp.lt.s32.totalorder %s1554_s8, 1  ;;  %s1810_s4 = scalar_lea.vmem [#allocation13], %s1089_s25 }
  0x5c   : > { %p1095_p7 = scmp.ne.s32.totalorder %s1546_s29, 0 }
  0x5d   : > { %s367_s9 = scalar_select %p366_p12, %s1554_s8, 1 }
  0x5e   : > { %375 = sbr.rel (%p1095_p7) target bundleno = 304 (0x130), region = 64 }
  0x5f   : > { %s1120_s11 = sshll.u32 %s367_s9, 4 }
  0x60   : > { %s1808_s24 = scalar_lea.vmem %s1986_s1, %s1120_s11 }
  0x63   : > { %v377_v0 = vld [vmem:[%s1793_s26 + $0x8] sm:$0xff]  ;;  %v376_v1 = vld [vmem:[%s1793_s26] sm:$0xff]  ;;  %vm392_vm0 = vcmask 130048   ;;  %v1578_v5 = vmov 0   ;;  %v1579_v7 = vmov -inf   ;;  %v1580_v8 = vmov 0.0  }
  0x64   : > { %v378_v2 = vld [vmem:[#allocation10] sm:$0xff]  ;;  %1154 = vmatprep.subr.mxu0 %v377_v0  ;;  %v379_v4 = vld [vmem:[#allocation10 + $0x8] sm:$0xff]  ;;  %1334 = vset.pattern.permute.xlu0 %v1578_v5  ;;  %484 = vst [vmem:[#allocation3] sm:$0x1] %v1579_v7  ;;  %485 = vst [vmem:[#allocation4] sm:$0x1] %v1580_v8 }
  0x65   : > { %1158 = vmatprep.mubr.msk.f32.mxu0 %vm392_vm0, %v378_v2  ;;  %v380_v3 = vld [vmem:[%s1988_s3] sm:$0xff]  ;;  %1155 = vmatpush3.msra.mxu0 %v377_v0  ;;  %v381_v6 = vld [vmem:[%s1988_s3 + $0x8] sm:$0xff]  ;;  %486 = vst [vmem:[#allocation5] sm:$0xff] %v1580_v8  ;;  %487 = vst [vmem:[#allocation5 + $0x8] sm:$0xff] %v1580_v8 }
  0x66   : > { %1156 = vmatprep.subr.mxu0 %v376_v1  ;;  %384 = vperm.xlu0 %1334, %v380_v3  }
  0x67   : > { %1157 = vmatpush3.msra.mxu0 %v376_v1 }
  0x68   : > { %1159 = vmatmul.mubr.msk.f32.vlgmr.msra.gmra.mxu0 %vm392_vm0, %v379_v4 }
  0x6a   : > { %389 = vperm.xlu0 %1334, %v381_v6  }
  0xe1   : > { %v385_v9 = vpop.permute.xlu0 %384 }
  0xe5   : > { %v390_v11 = vpop.permute.xlu0 %389 }
 0x128   : > { %v1160_v10 = vpop.f32.mrf.mxu0 }
 0x129   : > { %v471_v13 = vadd.f32 %v1160_v10, %v390_v11 }
 0x12a   : > { %v465_v12 = vpop.f32.mrf.mxu0 }
 0x12b   : > { %v466_v14 = vadd.f32 %v465_v12, %v385_v9 }
 0x12d   : > { %v1126_v15 = vpack.c.bf16 %v471_v13, %v466_v14 }
 0x12f   : > { %1127 = vst [vmem:[#allocation2] sm:$0xff] %v1126_v15  }
 0x130 PF: > { %s1100_s20 = sshll.u32 %s1546_s29, 7  ;;  %vm525_vm1 = vcmask 130048   ;;  %v1581_v26 = vmov 0.0   ;;  %vm1582_vm2 = vmmov 0   ;;  %v674_v60 = vlaneseq  ;;  %v647_v1 = vld [vmem:[#allocation3] sm:$0x1] }
 0x131   : > { %s489_s12 = sshra.s32 %s1100_s20, 7  ;;  %1179 = vmatprep.subr.bf16.mxu1 %v1581_v26  ;;  %1195 = vmatprep.mubr.msk.bf16.mxu1 %vm1582_vm2, %v1581_v26  ;;  %p1112_p11 = scmp.ne.s32.totalorder %s1546_s29, 1 }
 0x132   : > { %s1101_s2 = sshll.u32 %s489_s12, 2  ;;  %v675_v63 = vshrl.u32 %v674_v60, 7  ;;  %s927_s29 = sld [smem:[#allocation6]] (!%p1112_p11) }
 0x133   : > { %s492_s25 = scalar_lea.vmem %s1808_s24, %s1101_s2 }
 0x134   : > { %v1823_v17 = vld [vmem:[%s492_s25] ss:$8 sps:$4 sm:$0xff]   ;;  %v1866_v3 = vsub.s32 0, %v675_v63 }
 0x135   : > { %503 = vxpose.xlu0.c.b16.start.end [1/1] (short) %v1823_v17, 128 }
 0x136   : > { %v1336_v16 = vld [vmem:[#allocation2] sm:$0xff]  }
 0x137   : > { %1161 = vmatprep.subr.bf16.mxu0 %v1336_v16 }
 0x138   : > { %1162 = vmatpush3.bf16.msra.mxu0 %v1336_v16 }
 0x197   : > { %v511_v18 = vpop.trf.xlu0 }
 0x198   : > { %1163 = vmatprep.mubr.msk.bf16.mxu0 %vm525_vm1, %v511_v18 }
 0x19b   : > { %v512_v19 = vpop.trf.xlu0 }
 0x19c   : > { %1164 = vmatmul.mubr.msk.bf16.vlgmr.msra.gmra.mxu0 %vm525_vm1, %v512_v19 }
 0x19f   : > { %v513_v20 = vpop.trf.xlu0 }
 0x1a0   : > { %1167 = vmatprep.mubr.msk.bf16.mxu0 %vm525_vm1, %v513_v20 }
 0x1a3   : > { %v514_v21 = vpop.trf.xlu0 }
 0x1a4   : > { %1168 = vmatmul.mubr.msk.bf16.gmra.mxu0 %vm525_vm1, %v514_v21 }
 0x1a7   : > { %v515_v22 = vpop.trf.xlu0 }
 0x1a8   : > { %1171 = vmatprep.mubr.msk.bf16.mxu0 %vm525_vm1, %v515_v22 }
 0x1ab   : > { %v516_v23 = vpop.trf.xlu0 }
 0x1ac   : > { %1172 = vmatmul.mubr.msk.bf16.gmra.mxu0 %vm525_vm1, %v516_v23 }
 0x1af   : > { %v517_v24 = vpop.trf.xlu0 }
 0x1b0   : > { %1175 = vmatprep.mubr.msk.bf16.mxu0 %vm525_vm1, %v517_v24 }
 0x1b3   : > { %v518_v25 = vpop.trf.xlu0 }
 0x1b4   : > { %1176 = vmatmul.mubr.msk.bf16.gmra.mxu0 %vm525_vm1, %v518_v25 }
 0x25c   : > { %v1165_v27 = vpop.f32.mrf.mxu0 }
 0x25e   : > { %v584_v28 = vpop.f32.mrf.mxu0 }
 0x260   : > { %v1166_v29 = vpop.f32.mrf.mxu0 }
 0x262   : > { %v587_v30 = vpop.f32.mrf.mxu0 }
 0x264   : > { %v1836_v31 = vpop.f32.mrf.mxu0 }
 0x265   : > { %v650_v42 = vmax.f32 %v1165_v27, %v1836_v31 }
 0x266   : > { %v600_v32 = vpop.f32.mrf.mxu0 }
 0x267   : > { %v648_v43 = vmax.f32 %v584_v28, %v600_v32 }
 0x268   : > { %v1838_v33 = vpop.f32.mrf.mxu0 }
 0x269   : > { %v651_v40 = vmax.f32 %v1166_v29, %v1838_v33 }
 0x26a   : > { %v603_v34 = vpop.f32.mrf.mxu0 }
 0x26b   : > { %v649_v44 = vmax.f32 %v587_v30, %v603_v34 }
 0x26c   : > { %v1840_v35 = vpop.f32.mrf.mxu0 }
 0x26d   : > { %v654_v47 = vmax.f32 %v650_v42, %v1840_v35 }
 0x26e   : > { %v1842_v36 = vpop.f32.mrf.mxu0 }
 0x26f   : > { %v652_v48 = vmax.f32 %v648_v43, %v1842_v36 }
 0x270   : > { %v1844_v37 = vpop.f32.mrf.mxu0 }
 0x271   : > { %v655_v45 = vmax.f32 %v651_v40, %v1844_v37 }
 0x272   : > { %v1846_v38 = vpop.f32.mrf.mxu0 }
 0x273   : > { %v653_v49 = vmax.f32 %v649_v44, %v1846_v38 }
 0x274   : > { %v1848_v39 = vpop.f32.mrf.mxu0 }
 0x275   : > { %v658_v52 = vmax.f32 %v654_v47, %v1848_v39 }
 0x276   : > { %v1851_v41 = vpop.f32.mrf.mxu0 }
 0x277   : > { %v656_v53 = vmax.f32 %v652_v48, %v1851_v41 }
 0x278   : > { %v1855_v46 = vpop.f32.mrf.mxu0 }
 0x279   : > { %v659_v50 = vmax.f32 %v655_v45, %v1855_v46 }
 0x27a   : > { %v1861_v51 = vpop.f32.mrf.mxu0 }
 0x27b   : > { %v657_v54 = vmax.f32 %v653_v49, %v1861_v51  ;;  %v661_v55 = vmax.f32 %v658_v52, %v659_v50 }
 0x27d   : > { %v660_v56 = vmax.f32 %v656_v53, %v657_v54 }
 0x27f   : > { %v662_v57 = vmax.f32 %v660_v56, %v661_v55 }
 0x281   : > { %v663_v58 = vrot.slane %v662_v57, 4 }
 0x283   : > { %v664_v59 = vmax.f32 %v662_v57, %v663_v58 }
 0x285   : > { %v665_v61 = vrot.slane %v664_v59, 2 }
 0x287   : > { %v666_v62 = vmax.f32 %v664_v59, %v665_v61 }
 0x289   : > { %v667_v0 = vrot.slane %v666_v62, 1 }
 0x28b   : > { %v668_v2 = vmax.f32 %v666_v62, %v667_v0 }
 0x28d   : > { %v669_v4 = vmax.f32 %v647_v1, %v668_v2 }
 0x28f   : > { %v670_v5 = vsub.f32 %v647_v1, %v669_v4  ;;  %v677_v6 = vrot.slane %v669_v4, %v1866_v3  ;;  %815 = vst [vmem:[#allocation3] sm:$0x1] %v669_v4 }
 0x291   : > { %v671_v7 = vmul.f32 1.442695, %v670_v5  ;;  %v679_v8 = vsub.f32 %v584_v28, %v677_v6  ;;  %v680_v9 = vsub.f32 %v587_v30, %v677_v6  ;;  %v681_v10 = vsub.f32 %v1165_v27, %v677_v6 }
 0x292   : > { %v682_v11 = vsub.f32 %v1166_v29, %v677_v6  ;;  %v683_v14 = vsub.f32 %v600_v32, %v677_v6  ;;  %v684_v16 = vsub.f32 %v603_v34, %v677_v6  ;;  %v685_v19 = vsub.f32 %v1836_v31, %v677_v6 }
 0x293   : > { %1337 = vpow2.f32 %v671_v7  ;;  %v695_v12 = vmul.f32 1.442695, %v679_v8  ;;  %v697_v13 = vmul.f32 1.442695, %v680_v9  ;;  %v699_v15 = vmul.f32 1.442695, %v681_v10 }
 0x294   : > { %v701_v18 = vmul.f32 1.442695, %v682_v11  ;;  %v686_v20 = vsub.f32 %v1838_v33, %v677_v6  ;;  %v703_v21 = vmul.f32 1.442695, %v683_v14  ;;  %v687_v22 = vsub.f32 %v1842_v36, %v677_v6 }
 0x295   : > { %1339 = vpow2.f32 %v695_v12  ;;  %v688_v23 = vsub.f32 %v1846_v38, %v677_v6  ;;  %v705_v24 = vmul.f32 1.442695, %v684_v16  ;;  %v707_v25 = vmul.f32 1.442695, %v685_v19 }
 0x296   : > { %1341 = vpow2.f32 %v697_v13  ;;  %v693_v27 = vsub.f32 %v1848_v39, %v677_v6  ;;  %v709_v28 = vmul.f32 1.442695, %v686_v20  ;;  %v694_v29 = vsub.f32 %v1855_v46, %v677_v6 }
 0x297   : > { %1343 = vpow2.f32 %v699_v15  ;;  %v691_v30 = vsub.f32 %v1851_v41, %v677_v6  ;;  %v711_v31 = vmul.f32 1.442695, %v687_v22  ;;  %v692_v33 = vsub.f32 %v1861_v51, %v677_v6 }
 0x298   : > { %1345 = vpow2.f32 %v701_v18  ;;  %v713_v34 = vmul.f32 1.442695, %v688_v23  ;;  %v723_v36 = vmul.f32 1.442695, %v693_v27  ;;  %v689_v39 = vsub.f32 %v1840_v35, %v677_v6  ;;  %v756_v23 = vld [vmem:[#allocation4] sm:$0x1] }
 0x299   : > { %1347 = vpow2.f32 %v703_v21  ;;  %v725_v40 = vmul.f32 1.442695, %v694_v29  ;;  %v719_v42 = vmul.f32 1.442695, %v691_v30  ;;  %v690_v43 = vsub.f32 %v1844_v37, %v677_v6 }
 0x29a   : > { %1349 = vpow2.f32 %v705_v24  ;;  %v721_v44 = vmul.f32 1.442695, %v692_v33  ;;  %v715_v46 = vmul.f32 1.442695, %v689_v39 }
 0x29b   : > { %1351 = vpow2.f32 %v707_v25  ;;  %v717_v35 = vmul.f32 1.442695, %v690_v43 }
 0x29c   : > { %1353 = vpow2.f32 %v709_v28 }
 0x29d   : > { %1355 = vpow2.f32 %v711_v31  ;;  %v760_v31 = vld [vmem:[#allocation5] sm:$0xff] }
 0x29e   : > { %1357 = vpow2.f32 %v713_v34 }
 0x29f   : > { %1359 = vpow2.f32 %v723_v36  ;;  %v761_v36 = vld [vmem:[#allocation5 + $0x8] sm:$0xff] }
 0x2a0   : > { %v1876_v32 = vpop.eup %1337  ;;  %1361 = vpow2.f32 %v725_v40 }
 0x2a1   : > { %v1881_v38 = vrot.slane %v1876_v32, %v1866_v3  ;;  %1363 = vpow2.f32 %v719_v42  ;;  %v757_v27 = vmul.f32 %v1876_v32, %v756_v23 }
 0x2a2   : > { %v1884_v41 = vpop.eup %1339  ;;  %1365 = vpow2.f32 %v721_v44 }
 0x2a3   : > { %v1887_v45 = vpop.eup %1341  ;;  %1367 = vpow2.f32 %v715_v46  ;;  %v768_v33 = vmul.f32 %v1881_v38, %v760_v31  ;;  %v769_v32 = vmul.f32 %v1881_v38, %v761_v36 }
 0x2a4   : > { %v727_v47 = vadd.f32 %v1887_v45, %v1884_v41  ;;  %v1344_v48 = vpop.eup %1343  ;;  %1369 = vpow2.f32 %v717_v35  ;;  %v748_v30 = vpack.c.bf16 %v1887_v45, %v1884_v41 }
 0x2a5   : > { %v1346_v50 = vpop.eup %1345 }
 0x2a6   : > { %v728_v49 = vadd.f32 %v1344_v48, %v727_v47  ;;  %v1348_v52 = vpop.eup %1347  ;;  %v749_v25 = vpack.c.bf16 %v1346_v50, %v1344_v48 }
 0x2a7   : > { %v1350_v53 = vpop.eup %1349 }
 0x2a8   : > { %v729_v51 = vadd.f32 %v1346_v50, %v728_v49  ;;  %v1352_v54 = vpop.eup %1351  ;;  %v750_v21 = vpack.c.bf16 %v1350_v53, %v1348_v52 }
 0x2a9   : > { %v1354_v56 = vpop.eup %1353 }
 0x2aa   : > { %v730_v37 = vadd.f32 %v1348_v52, %v729_v51  ;;  %v1356_v57 = vpop.eup %1355  ;;  %v751_v18 = vpack.c.bf16 %v1354_v56, %v1352_v54 }
 0x2ab   : > { %v1358_v59 = vpop.eup %1357 }
 0x2ac   : > { %v731_v55 = vadd.f32 %v1350_v53, %v730_v37  ;;  %v1360_v60 = vpop.eup %1359  ;;  %v752_v14 = vpack.c.bf16 %v1358_v59, %v1356_v57 }
 0x2ad   : > { %v1362_v62 = vpop.eup %1361 }
 0x2ae   : > { %v732_v58 = vadd.f32 %v1352_v54, %v731_v55  ;;  %v1364_v63 = vpop.eup %1363  ;;  %v755_v1 = vpack.c.bf16 %v1362_v62, %v1360_v60 }
 0x2af   : > { %v1366_v2 = vpop.eup %1365 }
 0x2b0   : > { %v733_v61 = vadd.f32 %v1354_v56, %v732_v58  ;;  %1180 = vmatpush3.bf16.msra.mxu1 %v755_v1  ;;  %v1368_v5 = vpop.eup %1367  ;;  %v754_v7 = vpack.c.bf16 %v1366_v2, %v1364_v63 }
 0x2b1   : > { %1181 = vmatprep.subr.bf16.mxu1 %v1581_v26  ;;  %v1370_v8 = vpop.eup %1369 }
 0x2b2   : > { %v734_v0 = vadd.f32 %v1356_v57, %v733_v61  ;;  %v753_v11 = vpack.c.bf16 %v1370_v8, %v1368_v5 }
 0x2b4   : > { %v735_v4 = vadd.f32 %v1358_v59, %v734_v0  ;;  %1182 = vmatpush3.bf16.msra.mxu1 %v754_v7 }
 0x2b5   : > { %1183 = vmatprep.subr.bf16.mxu1 %v1581_v26 }
 0x2b6   : > { %v736_v6 = vadd.f32 %v1368_v5, %v735_v4 }
 0x2b8   : > { %v737_v9 = vadd.f32 %v1370_v8, %v736_v6  ;;  %1184 = vmatpush3.bf16.msra.mxu1 %v753_v11 }
 0x2b9   : > { %1185 = vmatprep.subr.bf16.mxu1 %v1581_v26 }
 0x2ba   : > { %v738_v10 = vadd.f32 %v1364_v63, %v737_v9 }
 0x2bc   : > { %v739_v12 = vadd.f32 %v1366_v2, %v738_v10  ;;  %1186 = vmatpush3.bf16.msra.mxu1 %v752_v14 }
 0x2bd   : > { %1187 = vmatprep.subr.bf16.mxu1 %v1581_v26 }
 0x2be   : > { %v740_v13 = vadd.f32 %v1360_v60, %v739_v12 }
 0x2c0   : > { %v741_v15 = vadd.f32 %v1362_v62, %v740_v13  ;;  %1188 = vmatpush3.bf16.msra.mxu1 %v751_v18 }
 0x2c1   : > { %1189 = vmatprep.subr.bf16.mxu1 %v1581_v26 }
 0x2c2   : > { %v742_v16 = vrot.slane %v741_v15, 4 }
 0x2c4   : > { %v743_v19 = vadd.f32 %v742_v16, %v741_v15  ;;  %1190 = vmatpush3.bf16.msra.mxu1 %v750_v21 }
 0x2c5   : > { %1191 = vmatprep.subr.bf16.mxu1 %v1581_v26 }
 0x2c6   : > { %v744_v20 = vrot.slane %v743_v19, 2 }
 0x2c8   : > { %v745_v22 = vadd.f32 %v744_v20, %v743_v19  ;;  %1192 = vmatpush3.bf16.msra.mxu1 %v749_v25 }
 0x2c9   : > { %1193 = vmatprep.subr.bf16.mxu1 %v1581_v26 }
 0x2ca   : > { %v746_v24 = vrot.slane %v745_v22, 1 }
 0x2cc   : > { %v747_v28 = vadd.f32 %v746_v24, %v745_v22  ;;  %1194 = vmatpush3.bf16.msra.mxu1 %v748_v30 }
 0x2ce   : > { %v758_v29 = vadd.f32 %v757_v27, %v747_v28 }
 0x2cf   : > { %1196 = vmatmul.mubr.bf16.vlgmr.msra.gmra.mxu1 %v1823_v17 }
 0x2d0   : > { %759 = vst [vmem:[#allocation4] sm:$0x1] %v758_v29 }
 0x38f   : > { %v804_v34 = vpop.f32.mrf.mxu1 }
 0x390   : > { %v811_v39 = vadd.f32 %v804_v34, %v768_v33 }
 0x391   : > { %v1197_v40 = vpop.f32.mrf.mxu1 }
 0x392   : > { %813 = vst [vmem:[#allocation5] sm:$0xff] %v811_v39  ;;  %819 = sbr.rel (%p1112_p11) target bundleno = 1144 (0x478), region = 68 }
 0x393   : > { %v807_v42 = vpop.f32.mrf.mxu1 }
 0x394   : > { %v812_v26 = vadd.f32 %v807_v42, %v769_v32 }
 0x395   : > { %v1198_v43 = vpop.f32.mrf.mxu1 }
 0x396   : > { %814 = vst [vmem:[#allocation5 + $0x8] sm:$0xff] %v812_v26 }
 0x397   : > { %v820_v41 = vld [vmem:[#allocation4] sm:$0x1]  ;;  %v832_v17 = vld [vmem:[#allocation12] sm:$0xff]  ;;  %v1583_v44 = vmov 0   ;;  %v834_v45 = vld [vmem:[%s1990_s5] sm:$0xff]  ;;  %v928_v54 = vstv %s927_s29 }
 0x398   : > { %1372 = vrcp.f32 %v820_v41  ;;  %1371 = vset.pattern.permute.xlu0 %v1583_v44  ;;  %1203 = vmatprep.mubr.msk.f32.mxu0 %vm525_vm1, %v832_v17  ;;  %v835_v38 = vld [vmem:[%s1990_s5 + $0x8] sm:$0xff]  ;;  %v833_v51 = vld [vmem:[#allocation12 + $0x8] sm:$0xff] }
 0x399   : > { %838 = vperm.xlu0 %1371, %v834_v45   ;;  %v822_v48 = vld [vmem:[#allocation5] sm:$0xff]  ;;  %v932_v56 = vld [vmem:[%s1793_s26 + $0x8] sm:$0xff] }
 0x39a   : > { %v931_v59 = vld [vmem:[%s1793_s26] sm:$0xff] }
 0x39d   : > { %843 = vperm.xlu0 %1371, %v835_v38   ;;  %v823_v47 = vld [vmem:[#allocation5 + $0x8] sm:$0xff] }
 0x3a5   : > { %v1373_v46 = vpop.eup %1372 }
 0x3a6   : > { %v828_v35 = vrot.slane %v1373_v46, %v1866_v3 }
 0x3a8   : > { %v831_v49 = vmul.f32 %v828_v35, %v823_v47  ;;  %v830_v50 = vmul.f32 %v828_v35, %v822_v48 }
 0x3aa   : > { %1199 = vmatprep.subr.mxu0 %v831_v49 }
 0x3ab   : > { %1200 = vmatpush3.msra.mxu0 %v831_v49 }
 0x3ac   : > { %1201 = vmatprep.subr.mxu0 %v830_v50 }
 0x3ad   : > { %1202 = vmatpush3.msra.mxu0 %v830_v50 }
 0x3ae   : > { %1204 = vmatmul.mubr.msk.f32.vlgmr.msra.gmra.mxu0 %vm525_vm1, %v833_v51 }
 0x414   : > { %v839_v52 = vpop.permute.xlu0 %838 }
 0x418   : > { %v844_v37 = vpop.permute.xlu0 %843 }
 0x46e   : > { %v1205_v53 = vpop.f32.mrf.mxu0 }
 0x46f   : > { %v924_v55 = vadd.f32 %v1205_v53, %v844_v37 }
 0x470   : > { %v918_v3 = vpop.f32.mrf.mxu0 }
 0x471   : > { %v930_v57 = vmul.f32 %v928_v54, %v924_v55  ;;  %v919_v58 = vadd.f32 %v918_v3, %v839_v52 }
 0x473   : > { %v934_v60 = vadd.f32 %v932_v56, %v930_v57  ;;  %v929_v61 = vmul.f32 %v928_v54, %v919_v58 }
 0x475   : > { %936 = vst [vmem:[%s1810_s4 + $0x8] sm:$0xff] %v934_v60  ;;  %v933_v62 = vadd.f32 %v931_v59, %v929_v61 }
 0x477   : > { %935 = vst [vmem:[%s1810_s4] sm:$0xff] %v933_v62 }
 0x478 PF: > { %s1116_s18 = sshll.u32 %s1554_s8, 2  ;;  %s952_s14 = sshll.u32 %s1810_s4, 4  ;;  %s1921_s14 = int_to_ptr.vmem [resolvable:$true] %s952_s14 }
 0x479   : > { %s949_s24 = sadd.s32 %s1550_s30, %s1116_s18  ;;  %s938_s20 = scalar_lea.sflag [#allocation9], %s1789_s21 }
 0x47a   : > { %s1117_s16 = sshll.u32 %s949_s24, 7  ;;  %s1454_s12 = scalar_lea.vmem %s1921_s14, 256 }
 0x47b   : > { %s1926_s26 = scalar_lea.hbm %s1992_s7, %s1117_s16  ;;  %p1455_p1 = scmp.ne.s32.totalorder %s1921_s14, %s1454_s12 }
 0x47c   : > { %p2027_p13 = scmp.ne.s32.totalorder %s2013_s17, 0  ;;  %s1584_s8 = smov [#allocation13]  }
 0x47d   : > { %s1458_s30 = sshll.u32 %s1584_s8, 4  ;;  %s1459_s30 = int_to_ptr.vmem [resolvable:$false] %s1458_s30 }
 0x47e   : > { %p1456_p5 = pnand %p1455_p1, %p2027_p13  ;;  %s1460_s4 = scalar_lea.vmem %s1459_s30, 512 }
 0x47f   : > { %p1461_p9 = scmp.lt.s32.totalorder %s1921_s14, %s1459_s30  ;;  %p1462_p8 = scmp.lt.s32.totalorder %s1460_s4, %s1454_s12 }
 0x480   : > { %p1457_p0 = pneg %p1456_p5 }
 0x481   : > { %p1463_p3 = por %p1462_p8, %p1461_p9 }
 0x483   : > { %p1464_p6 = pnand %p1463_p3, %p1457_p0 }
 0x485   : > { %1467 = shalt.err (!%p1464_p6)
}
 0x486   : > { %s1468_s2 = scalar_lea.hbm %s1926_s26, 256  ;;  %s1472_s9 = scalar_lea.hbm %s1992_s7, 1024 }
 0x487   : > { %p1469_p10 = scmp.ne.s32.totalorder %s1926_s26, %s1468_s2  ;;  %p1473_p12 = scmp.lt.s32.totalorder %s1926_s26, %s1992_s7 }
 0x488   : > { %p1474_p7 = scmp.lt.s32.totalorder %s1472_s9, %s1468_s2 }
 0x489   : > { %p1470_p4 = pnand %p1469_p10, %p2027_p13 }
 0x48a   : > { %p1475_p11 = por %p1474_p7, %p1473_p12 }
 0x48b   : > { %p1471_p2 = pneg %p1470_p4 }
 0x48d   : > { %p1476_p1 = pnand %p1475_p11, %p1471_p2 }
 0x48f   : > { %1479 = shalt.err (!%p1476_p1)
}
 0x490   : > { %s1585_s29 = smov 128   ;;  %s1586_s18 = smov 256  }
 0x491   : > { %s1587_s24 = smov 8  }
 0x492   : > { %1216 = dma.vmem_to_hbm [thread:$0]  (%p2027_p13), %s1921_s14, 256, %s1926_s26, %s938_s20, %s1585_s29, %s1586_s18, %s1587_s24  }
 0x493 PF: > { %s2028_s16 = sld [smem:[#allocation19_spill]] }
 0x494   : > { %s2029_s13 = sld [smem:[#allocation17_spill]] }
 0x495   : > { %s2030_s15 = sld [smem:[#allocation20_spill]] }
 0x499   : > { %p1238_p5 = scmp.ge.s32.totalorder %s2028_s16, 2 }
 0x49a   : > { %s967_s12 = sand.u32 1, %s2029_s13  }
 0x49b   : > { %p2031_p0 = scmp.ne.s32.totalorder %s2030_s15, 0  ;;  %s968_s8 = scalar_lea.sflag [#allocation9], %s967_s12 }
 0x49d   : > { %p1230_p9 = pnand %p1238_p5, %p2031_p0 }
 0x49f   : > { %p1231_p8 = pneg %p1230_p9 }
 0x4a1   : > { %1529 = dma.done.wait (%p1231_p8), %s968_s8, 256  }
 0x4a2   : > { %1531 = vsyncadd (%p1231_p8), %s968_s8, 4294967040  ;;  %s25_s11 = sadd.s32 1, %s2028_s16   ;;  %s2032_s29 = sld [smem:[#allocation18_spill]] }
 0x4a3   : > { %p22_p3 = scmp.ge.s32.totalorder %s25_s11, 10   ;;  %s2033_s9 = sld [smem:[#allocation21_spill]] }
 0x4a4   : > { %s2034_s17 = sld [smem:[#allocation22_spill]]  ;;  %s2035_s26 = smov %s1538_s27 }
 0x4a5   : > { %s2036_s27 = smov %s1542_s28  ;;  %s2037_s28 = smov %s1784_s0 }
 0x4a6   : > { %s2038_s30 = smov %s1562_s6  ;;  %s2039_s8 = smov %s1566_s10 }
 0x4a7   : > { %s2041_s10 = smov %s2051_s22  ;;  %24 = sbr.rel (!%p22_p3) target bundleno = 14 (0xe), region = 113 }
 0x4aa   : > { %s2040_s6 = smov %s2034_s17 }
 0x4ac   :  { %973 = vsyncpa [#allocation8], 1 }
 0x4ad   :  { %975 = vsyncpa [#allocation8 + $0x1], 1 }
 0x4ae   :  { %976 = vsyncpa [#allocation11], 1 }
 0x4af   :  { %977 = vsyncpa [#allocation9], 1 }
 0x4b0   :  { %979 = vsyncpa [#allocation9 + $0x1], 1 }

</bundles_post_ra>
